<compile_context>
chip_gen: v6e
topology: v6e:2x2x1
jax: 0.10.0
libtpu: 0.0.40
codegen_flags: <defaults>
</compile_context>

<pallas_src>
import functools

import jax
import jax.numpy as jnp
from jax import lax
from jax.experimental import pallas as pl
from jax.experimental.pallas import tpu as pltpu


def _round_up(x, m):
    return ((x + m - 1) // m) * m


def _focal_loss_kernel(x_ref, t_ref, a_ref, out_ref, acc_ref, *,
                       gamma, n_valid, tile_n):
    i = pl.program_id(0)

    @pl.when(i == 0)
    def _init():
        acc_ref[...] = jnp.zeros_like(acc_ref)

    x = x_ref[...].astype(jnp.float32)          # (TN, C)
    t = t_ref[...]                              # (TN, 1) int32
    alpha = a_ref[...].astype(jnp.float32)      # (1, C)
    tn, c = x.shape

    # Numerically stable log-sum-exp over the class (lane) axis.
    m = jnp.max(x, axis=-1, keepdims=True)                                   # (TN, 1)
    lse = m + jnp.log(jnp.sum(jnp.exp(x - m), axis=-1, keepdims=True))       # (TN, 1)

    # Gather x[i, t_i] and alpha[t_i] via one-hot masks (no dynamic gather on TPU).
    col = lax.broadcasted_iota(jnp.int32, (tn, c), 1)                        # (TN, C)
    onehot = col == t                                                        # (TN, C)
    x_t = jnp.sum(jnp.where(onehot, x, 0.0), axis=-1, keepdims=True)         # (TN, 1)
    a_t = jnp.sum(jnp.where(onehot, alpha, 0.0), axis=-1, keepdims=True)     # (TN, 1)

    ce = a_t * (lse - x_t)                      # weighted per-sample cross entropy
    pt = jnp.exp(-ce)
    one_minus_pt = 1.0 - pt

    g = float(gamma)
    if g == 2.0:                                # common case: one VPU multiply
        w = one_minus_pt * one_minus_pt
    elif g == float(int(g)) and 0 <= int(g) <= 8:
        w = one_minus_pt ** int(g)              # integer_pow -> repeated multiplies
    else:
        w = one_minus_pt ** jnp.float32(g)      # general float exponent (EUP pow)
    focal = w * ce                              # (TN, 1)

    # Mask rows that are padding beyond the true batch size.
    row = lax.broadcasted_iota(jnp.int32, (tn, 1), 0) + i * tile_n
    focal = jnp.where(row < n_valid, focal, 0.0)

    acc_ref[...] += jnp.sum(focal)

    @pl.when(i == pl.num_programs(0) - 1)
    def _finish():
        out_ref[...] = acc_ref[...] * jnp.float32(1.0 / n_valid)


def focal_loss(inputs, targets, alpha, gamma=2.0):
    """inputs: (N, C) f32/bf16 logits; targets: (N,) int; alpha: (C,) weights."""
    n, c = inputs.shape
    itemsize = jnp.dtype(inputs.dtype).itemsize

    # Pick the N-tile: keep one logits block <= ~4 MiB so the double-buffered
    # pipeline fits comfortably under every generation's default scoped VMEM.
    target_block_bytes = 4 * 1024 * 1024
    tile_n = max(8, min(512, target_block_bytes // max(1, c * itemsize)))
    tile_n = max(8, (tile_n // 8) * 8)
    tile_n = min(tile_n, _round_up(n, 8))

    n_pad = _round_up(n, tile_n)
    grid_n = n_pad // tile_n

    x = inputs
    t2d = targets.astype(jnp.int32).reshape(n, 1)
    if n_pad != n:
        x = jnp.pad(x, ((0, n_pad - n), (0, 0)))
        t2d = jnp.pad(t2d, ((0, n_pad - n), (0, 0)))
    a2d = alpha.astype(jnp.float32).reshape(1, c)

    # Explicit scoped-VMEM budget (2x double-buffered logits + targets + alpha),
    # with headroom; matters mainly on v5e (16 MiB default scoped VMEM).
    need = 2 * tile_n * c * itemsize + 2 * tile_n * 4 + c * 4 + (1 << 16)
    vmem_limit = int(min(max(2 * need, 16 * 1024 * 1024), 32 * 1024 * 1024))

    grid_spec = pltpu.PrefetchScalarGridSpec(
        num_scalar_prefetch=0,
        grid=(grid_n,),
        in_specs=[
            pl.BlockSpec((tile_n, c), lambda i: (i, 0)),   # logits tile
            pl.BlockSpec((tile_n, 1), lambda i: (i, 0)),   # targets tile
            pl.BlockSpec((1, c), lambda i: (0, 0)),        # alpha (resident)
        ],
        out_specs=pl.BlockSpec((1, 1), lambda i: (0, 0)),  # scalar, written once
        scratch_shapes=[pltpu.VMEM((1, 1), jnp.float32)],  # running focal sum
    )

    out = pl.pallas_call(
        functools.partial(_focal_loss_kernel,
                          gamma=float(gamma), n_valid=n, tile_n=tile_n),
        out_shape=jax.ShapeDtypeStruct((1, 1), jnp.float32),
        grid_spec=grid_spec,
        compiler_params=pltpu.CompilerParams(
            dimension_semantics=("arbitrary",),
            vmem_limit_bytes=vmem_limit,
        ),
    )(x, t2d, a2d)
    return out[0, 0]


if __name__ == "__main__":
    key = jax.random.PRNGKey(0)
    n_classes = 4
    batch = 8

    k1, k2 = jax.random.split(key)
    logits = jax.random.normal(k1, (batch, n_classes), dtype=jnp.float32)
    targets = jax.random.randint(k2, (batch,), 0, n_classes, dtype=jnp.int32)
    # module default: alpha = torch.ones(n_classes)
    alpha = jnp.ones((n_classes,), dtype=jnp.float32)

    loss = focal_loss(logits, targets, alpha, gamma=2.0)
    jax.block_until_ready(loss)

    # pure-JAX reference check (silent)
    logp = jax.nn.log_softmax(logits, axis=-1)
    ce_ref = -alpha[targets] * logp[jnp.arange(batch), targets]
    pt_ref = jnp.exp(-ce_ref)
    ref = jnp.mean((1.0 - pt_ref) ** 2.0 * ce_ref)
    assert jnp.allclose(loss, ref, rtol=1e-5, atol=1e-6), (loss, ref)

    print("KERNEL_OK")
</pallas_src>

<mosaic_0001>
module attributes {stable_mosaic.version = 11 : i64} {
  func.func @_focal_loss_kernel(%arg0: i32, %arg1: memref<8x4xf32, #tpu.memory_space<vmem>>, %arg2: memref<8x1xi32, #tpu.memory_space<vmem>>, %arg3: memref<1x4xf32, #tpu.memory_space<vmem>>, %arg4: memref<1x1xf32, #tpu.memory_space<vmem>>, %arg5: memref<1x1xf32, #tpu.memory_space<vmem>>) attributes {dimension_semantics = [#tpu.dimension_semantics<arbitrary>], iteration_bounds = array<i64: 1>, scalar_prefetch = 0 : i64, scratch_operands = 1 : i64, tpu.core_type = #tpu.core_type<tc>, window_params = [{transform_indices = @transform_0, window_bounds = array<i64: 8, 4>}, {transform_indices = @transform_1, window_bounds = array<i64: 8, 1>}, {pipeline_mode = #tpu.pipeline_mode<synchronous>, transform_indices = @transform_2, window_bounds = array<i64: 1, 4>}, {pipeline_mode = #tpu.pipeline_mode<synchronous>, transform_indices = @transform_3, window_bounds = array<i64: 1, 1>}]} {
    %c0_i32 = arith.constant 0 : i32
    %0 = arith.cmpi eq, %arg0, %c0_i32 : i32
    %1 = arith.extui %0 : i1 to i32
    %c0_i32_0 = arith.constant 0 : i32
    %2 = arith.cmpi ne, %1, %c0_i32_0 : i32
    scf.if %2 {
      %cst_22 = arith.constant 0.000000e+00 : f32
      %56 = vector.broadcast %cst_22 : f32 to vector<1x1xf32>
      %c0_23 = arith.constant 0 : index
      %c0_24 = arith.constant 0 : index
      %57 = vector.load %arg5[%c0_23, %c0_24] : memref<1x1xf32, #tpu.memory_space<vmem>>, vector<1x1xf32>
      tpu.vector_store %arg5[%c0_23, %c0_24], %56 {strides = array<i32>} : memref<1x1xf32, #tpu.memory_space<vmem>>, vector<1x1xf32>,
    } else {
    }
    %c0 = arith.constant 0 : index
    %c0_1 = arith.constant 0 : index
    %3 = vector.load %arg1[%c0, %c0_1] : memref<8x4xf32, #tpu.memory_space<vmem>>, vector<8x4xf32>
    %c0_2 = arith.constant 0 : index
    %c0_3 = arith.constant 0 : index
    %4 = vector.load %arg2[%c0_2, %c0_3] : memref<8x1xi32, #tpu.memory_space<vmem>>, vector<8x1xi32>
    %c0_4 = arith.constant 0 : index
    %c0_5 = arith.constant 0 : index
    %5 = vector.load %arg3[%c0_4, %c0_5] : memref<1x4xf32, #tpu.memory_space<vmem>>, vector<1x4xf32>
    %cst = arith.constant dense<0xFF800000> : vector<8xf32>
    %6 = vector.multi_reduction <maximumf>, %3, %cst [1] : vector<8x4xf32> to vector<8xf32>
    %7 = vector.shape_cast %6 : vector<8xf32> to vector<8x1xf32>
    %8 = vector.broadcast %7 : vector<8x1xf32> to vector<8x4xf32>
    %9 = arith.subf %3, %8 : vector<8x4xf32>
    %10 = math.exp %9 : vector<8x4xf32>
    %cst_6 = arith.constant dense<0.000000e+00> : vector<8xf32>
    %11 = vector.multi_reduction <add>, %10, %cst_6 [1] : vector<8x4xf32> to vector<8xf32>
    %12 = vector.shape_cast %11 : vector<8xf32> to vector<8x1xf32>
    %13 = math.log %12 : vector<8x1xf32>
    %14 = arith.addf %7, %13 : vector<8x1xf32>
    %15 = tpu.iota {dimensions = array<i32: 1>} : vector<8x4xi32>
    %16 = vector.broadcast %4 : vector<8x1xi32> to vector<8x4xi32>
    %17 = arith.cmpi eq, %15, %16 : vector<8x4xi32>
    %cst_7 = arith.constant 0.000000e+00 : f32
    %18 = vector.broadcast %cst_7 : f32 to vector<8x4xf32>
    %19 = arith.select %17, %3, %18 : vector<8x4xi1>, vector<8x4xf32>
    %cst_8 = arith.constant dense<0.000000e+00> : vector<8xf32>
    %20 = vector.multi_reduction <add>, %19, %cst_8 [1] : vector<8x4xf32> to vector<8xf32>
    %21 = vector.shape_cast %20 : vector<8xf32> to vector<8x1xf32>
    %cst_9 = arith.constant 0.000000e+00 : f32
    %22 = vector.shape_cast %5 : vector<1x4xf32> to vector<1x4xf32>
    %23 = vector.broadcast %22 : vector<1x4xf32> to vector<8x4xf32>
    %24 = vector.broadcast %cst_9 : f32 to vector<8x4xf32>
    %25 = arith.select %17, %23, %24 : vector<8x4xi1>, vector<8x4xf32>
    %cst_10 = arith.constant dense<0.000000e+00> : vector<8xf32>
    %26 = vector.multi_reduction <add>, %25, %cst_10 [1] : vector<8x4xf32> to vector<8xf32>
    %27 = vector.shape_cast %26 : vector<8xf32> to vector<8x1xf32>
    %28 = arith.subf %14, %21 : vector<8x1xf32>
    %29 = arith.mulf %27, %28 : vector<8x1xf32>
    %cst_11 = arith.constant 0.000000e+00 : f32
    %30 = vector.broadcast %cst_11 : f32 to vector<8x1xf32>
    %31 = arith.subf %30, %29 : vector<8x1xf32>
    %32 = math.exp %31 : vector<8x1xf32>
    %cst_12 = arith.constant 1.000000e+00 : f32
    %33 = vector.broadcast %cst_12 : f32 to vector<8x1xf32>
    %34 = arith.subf %33, %32 : vector<8x1xf32>
    %35 = arith.mulf %34, %34 : vector<8x1xf32>
    %36 = arith.mulf %35, %29 : vector<8x1xf32>
    %37 = tpu.iota {dimensions = array<i32: 0>} : vector<8x1xi32>
    %c8_i32 = arith.constant 8 : i32
    %38 = arith.muli %arg0, %c8_i32 : i32
    %39 = vector.broadcast %38 : i32 to vector<8x1xi32>
    %40 = arith.addi %37, %39 : vector<8x1xi32>
    %c8_i32_13 = arith.constant 8 : i32
    %41 = vector.broadcast %c8_i32_13 : i32 to vector<8x1xi32>
    %42 = arith.cmpi slt, %40, %41 : vector<8x1xi32>
    %cst_14 = arith.constant 0.000000e+00 : f32
    %43 = vector.broadcast %cst_14 : f32 to vector<8x1xf32>
    %44 = arith.select %42, %36, %43 : vector<8x1xi1>, vector<8x1xf32>
    %c0_15 = arith.constant 0 : index
    %c0_16 = arith.constant 0 : index
    %45 = vector.load %arg5[%c0_15, %c0_16] : memref<1x1xf32, #tpu.memory_space<vmem>>, vector<1x1xf32>
    %46 = vector.shape_cast %44 : vector<8x1xf32> to vector<1x8x1xf32>
    %cst_17 = arith.constant dense<0.000000e+00> : vector<1xf32>
    %47 = vector.multi_reduction <add>, %46, %cst_17 [1, 2] : vector<1x8x1xf32> to vector<1xf32>
    %48 = vector.shape_cast %47 : vector<1xf32> to vector<1x1x1xf32>
    %49 = vector.extract %48[0, 0, 0] : f32 from vector<1x1x1xf32>
    %50 = vector.broadcast %49 : f32 to vector<1x1xf32>
    %51 = arith.addf %45, %50 : vector<1x1xf32>
    %c0_18 = arith.constant 0 : index
    %c0_19 = arith.constant 0 : index
    %52 = vector.load %arg5[%c0_18, %c0_19] : memref<1x1xf32, #tpu.memory_space<vmem>>, vector<1x1xf32>
    tpu.vector_store %arg5[%c0_18, %c0_19], %51 {strides = array<i32>} : memref<1x1xf32, #tpu.memory_space<vmem>>, vector<1x1xf32>,
    %c0_i32_20 = arith.constant 0 : i32
    %53 = arith.cmpi eq, %arg0, %c0_i32_20 : i32
    %54 = arith.extui %53 : i1 to i32
    %c0_i32_21 = arith.constant 0 : i32
    %55 = arith.cmpi ne, %54, %c0_i32_21 : i32
    scf.if %55 {
      %c0_22 = arith.constant 0 : index
      %c0_23 = arith.constant 0 : index
      %56 = vector.load %arg5[%c0_22, %c0_23] : memref<1x1xf32, #tpu.memory_space<vmem>>, vector<1x1xf32>
      %cst_24 = arith.constant 1.250000e-01 : f32
      %57 = vector.broadcast %cst_24 : f32 to vector<1x1xf32>
      %58 = arith.mulf %56, %57 : vector<1x1xf32>
      %c0_25 = arith.constant 0 : index
      %c0_26 = arith.constant 0 : index
      %59 = vector.load %arg4[%c0_25, %c0_26] : memref<1x1xf32, #tpu.memory_space<vmem>>, vector<1x1xf32>
      tpu.vector_store %arg4[%c0_25, %c0_26], %58 {strides = array<i32>} : memref<1x1xf32, #tpu.memory_space<vmem>>, vector<1x1xf32>,
    } else {
    }
    return
  }
  func.func @transform_0(%arg0: i32) -> (i32, i32) {
    %c0_i32 = arith.constant 0 : i32
    %c0_i32_0 = arith.constant 0 : i32
    return %arg0, %c0_i32 : i32, i32
  }
  func.func @transform_1(%arg0: i32) -> (i32, i32) {
    %c0_i32 = arith.constant 0 : i32
    %c0_i32_0 = arith.constant 0 : i32
    return %arg0, %c0_i32 : i32, i32
  }
  func.func @transform_2(%arg0: i32) -> (i32, i32) {
    %c0_i32 = arith.constant 0 : i32
    %c0_i32_0 = arith.constant 0 : i32
    %c0_i32_1 = arith.constant 0 : i32
    return %c0_i32, %c0_i32_0 : i32, i32
  }
  func.func @transform_3(%arg0: i32) -> (i32, i32) {
    %c0_i32 = arith.constant 0 : i32
    %c0_i32_0 = arith.constant 0 : i32
    %c0_i32_1 = arith.constant 0 : i32
    return %c0_i32, %c0_i32_0 : i32, i32
  }
}

</mosaic_0001>

<bundles_post_ra>
// kernel: tpu_custom_call.1
= control target key start
LH: loop header
LB: loop body
LE: loop exit
PB: predicated region body
PF: predicated region fallthrough
CT: control target
= control target key end

     0   :  { %vm24_vm0 = vcmask 31744   ;;  %s185_s0 = inlined_call_operand.vmem [shape: f32[8,4], index: 0, kind: input, shape index: {}]   ;;  %s186_s1 = inlined_call_operand.vmem [shape: s32[8,1], index: 1, kind: input, shape index: {}]   ;;  %s187_s2 = inlined_call_operand.vmem [shape: f32[1,4], index: 2, kind: input, shape index: {}]   ;;  %s188_s3 = inlined_call_operand.hbm [shape: f32[1,1], index: 3, kind: output, shape index: {}]  }
   0x1   :  { %v21_v0 = vld [vmem:[%s185_s0] sm:$0xff] }
   0x2   :  { %8 = vsyncpa [#allocation4], 0  ;;  %v25_v1 = vsel %vm24_vm0, %v21_v0, -inf  ;;  %v143_v2 = vmov 0   ;;  %v22_v3 = vld [vmem:[%s186_s1] sm:$0xff]  ;;  %v37_v7 = vlaneseq  ;;  %vm73_vm2 = vcmask 7168  }
   0x3   :  { %114 = vset.pattern.permute.xlu0 %v143_v2  ;;  %v108_v13 = vld [vmem:[%s187_s2] ss:$0 sm:$0xff]  ;;  %vm19_vm3 = vcmask 0   ;;  %v144_v32 = vmov 0.0   ;;  %s145_s2 = smov [#allocation3]  }
   0x4   :  { %26 = vmax.xlane.f32.xlu0 %v25_v1  ;;  %v38_v8 = vand.u32 127, %v37_v7  ;;  %20 = vst.msk [vmem:[#allocation2] sm:$0x1] %vm19_vm3, %v144_v32  ;;  %s100_s17 = sshll.u32 %s145_s2, 4  ;;  %s101_s17 = int_to_ptr.vmem [resolvable:$true] %s100_s17 }
   0x5   :  { %s121_s18 = scalar_lea.vmem %s101_s17, 16  ;;  %s125_s19 = scalar_lea.vmem %s101_s17, 32 }
   0x6   :  { %p122_p0 = scmp.ne.s32.totalorder %s101_s17, %s121_s18  ;;  %p126_p1 = scmp.lt.s32.totalorder %s101_s17, %s101_s17 }
   0x7   :  { %p127_p2 = scmp.lt.s32.totalorder %s125_s19, %s121_s18 }
   0x9   :  { %p128_p3 = por %p127_p2, %p126_p1 }
   0xb   :  { %v72_v40 = vld [vmem:[#allocation2] sm:$0x1]  ;;  %p129_p4 = pnand %p128_p3, %p122_p0 }
  0x1a   :  { %40 = vperm.xlu0 %114, %v22_v3  }
  0x8d   :  { %v27_v4 = vpop.xlane.xlu0 %26 }
  0x8e   :  { %v28_v5 = vsub.f32 %v21_v0, %v27_v4 }
  0x90   :  { %v29_v6 = vmul.f32 1.442695, %v28_v5 }
  0x92   :  { %115 = vpow2.f32 %v29_v6 }
  0x95   :  { %v41_v9 = vpop.permute.xlu0 %40 }
  0x96   :  { %vm42_vm1 = vcmp.eq.s32.totalorder %v38_v8, %v41_v9 }
  0x97   :  { %v43_v11 = vsel %vm42_vm1, %v21_v0, 0.0  ;;  %v53_v15 = vsel %vm42_vm1, %v108_v13, 0.0 }
  0x98   :  { %v44_v14 = vsel %vm24_vm0, %v43_v11, 0.0  ;;  %v54_v16 = vsel %vm24_vm0, %v53_v15, 0.0 }
  0x9f   :  { %v116_v10 = vpop.eup %115 }
  0xa0   :  { %v31_v12 = vsel %vm24_vm0, %v116_v10, 0.0 }
  0xa1   :  { %32 = vadd.xlane.f32.xlu1 %v31_v12 }
  0xa5   :  { %45 = vadd.xlane.f32.xlu1 %v44_v14 }
  0xa9   :  { %55 = vadd.xlane.f32.xlu1 %v54_v16 }
 0x12a   :  { %v33_v17 = vpop.xlane.xlu1 %32 }
 0x12b   :  { %117 = vlog2.f32 %v33_v17 }
 0x12e   :  { %v46_v19 = vpop.xlane.xlu1 %45 }
 0x132   :  { %v56_v23 = vpop.xlane.xlu1 %55 }
 0x138   :  { %v118_v18 = vpop.eup %117 }
 0x139   :  { %v35_v20 = vmul.f32 0.6931472, %v118_v18 }
 0x13b   :  { %v36_v21 = vadd.f32 %v35_v20, %v27_v4 }
 0x13d   :  { %v57_v22 = vsub.f32 %v36_v21, %v46_v19 }
 0x13f   :  { %v58_v24 = vmul.f32 %v57_v22, %v56_v23 }
 0x141   :  { %v59_v25 = vsub.f32 0.0, %v58_v24 }
 0x143   :  { %v60_v26 = vmul.f32 1.442695, %v59_v25 }
 0x145   :  { %119 = vpow2.f32 %v60_v26 }
 0x152   :  { %v120_v27 = vpop.eup %119 }
 0x153   :  { %v62_v28 = vsub.f32 1.0, %v120_v27 }
 0x155   :  { %v63_v29 = vmul.f32 %v62_v28, %v62_v28 }
 0x157   :  { %v64_v30 = vmul.f32 %v63_v29, %v58_v24 }
 0x159   :  { %v74_v31 = vsel %vm73_vm2, %v64_v30, 0.0 }
 0x15a   :  { %75 = vadd.xlane.f32.xlu1 %v74_v31 }
 0x1e3   :  { %v76_v33 = vpop.xlane.xlu1 %75 }
 0x1e4   :  { %v77_v34 = vrot.slane %v76_v33, 4 }
 0x1e6   :  { %v78_v35 = vadd.f32 %v77_v34, %v76_v33 }
 0x1e8   :  { %v79_v36 = vrot.slane %v78_v35, 2 }
 0x1ea   :  { %v80_v37 = vadd.f32 %v79_v36, %v78_v35 }
 0x1ec   :  { %v81_v38 = vrot.slane %v80_v37, 1 }
 0x1ee   :  { %v82_v39 = vadd.f32 %v81_v38, %v80_v37 }
 0x1f0   :  { %109 = vpush %v82_v39 }
 0x221   :  { %s110_s1 = spop %109 }
 0x222   :  { %v84_v41 = vstv %s110_s1 }
 0x223   :  { %v85_v42 = vadd.f32 %v84_v41, %v72_v40 }
 0x225   :  { %87 = vst.msk [vmem:[#allocation2] sm:$0x1] %vm19_vm3, %v85_v42 }
 0x22c   :  { %v91_v43 = vld [vmem:[#allocation2] sm:$0x1] }
 0x22d   :  { %v92_v44 = vmul.f32 0.125, %v91_v43 }
 0x22f   :  { %93 = vst.msk [vmem:[#allocation3] sm:$0x1] %vm19_vm3, %v92_v44 }
 0x230   :  { %132 = shalt.err (!%p129_p4)
}
 0x231   :  { %103 = dma.vmem_to_hbm [thread:$0]  %s101_s17, 16, %s188_s3, [#allocation4]  }
 0x232   :  { %141 = dma.done.wait [#allocation4], 16  }
 0x233   :  { %142 = vsyncadd [#allocation4], 4294967280 }
 0x234   :  { %107 = vsyncpa [#allocation4], 1 }

</bundles_post_ra>
